<compile_context>
chip_gen: v6e
topology: v6e:2x2x1
jax: 0.10.0
libtpu: 0.0.40
codegen_flags: <defaults>
</compile_context>

<pallas_src>
import functools

import jax
import jax.numpy as jnp
from jax.experimental import pallas as pl
from jax.experimental.pallas import tpu as pltpu

GAMMA = 1.0   # module default
EPS = 1e-07   # module default (unused in the forward pass, kept for fidelity)

_LANE_ROW_BYTES = 512   # a (rows, 1) buffer is laid out 128 lanes wide in VMEM (f32/int32)


def _focal_ce_partial_kernel(logits_ref, target_ref, out_ref, *, n_total, tile_n, need_mask):
    # logits_ref: (TILE_N, C) VMEM ; target_ref: (TILE_N, 1) int32 VMEM
    # out_ref:    (1, 8, 128) f32 VMEM, resident across the inner (reduction) axis;
    #             holds this split's running CE sum broadcast across the block.
    i = pl.program_id(1)                      # position along the reduction axis

    @pl.when(i == 0)
    def _init():
        out_ref[...] = jnp.zeros_like(out_ref)

    x = logits_ref[...].astype(jnp.float32)   # (tn, C) f32 compute
    t = target_ref[...]                       # (tn, 1) int32

    # Numerically stable logsumexp over classes (lane axis).
    m = jnp.max(x, axis=-1, keepdims=True)
    lse = m + jnp.log(jnp.sum(jnp.exp(x - m), axis=-1, keepdims=True))

    # Gather logits[r, target[r]] via one-hot select (no per-row dynamic gather on TPU).
    cls = jax.lax.broadcasted_iota(jnp.int32, x.shape, 1)
    picked = jnp.sum(jnp.where(cls == t, x, 0.0), axis=-1, keepdims=True)

    ce = lse - picked                         # (tn, 1) per-row CE
    if need_mask:
        # Mask rows past the true batch size (partial last tile and/or clamped
        # duplicate tiles on a split). The select discards any garbage
        # (incl. NaN/Inf) computed for padded rows.
        tn = x.shape[0]
        row = jax.lax.broadcasted_iota(jnp.int32, (tn, 1), 0)
        tile_idx = pl.program_id(0) * pl.num_programs(1) + i
        ce = jnp.where(tile_idx * tile_n + row < n_total, ce, 0.0)

    out_ref[...] += jnp.sum(ce)               # scalar broadcast-add into resident block


def _sublane_multiple(itemsize):
    # f32 -> 8, bf16 -> 16, int8/fp8 -> 32 (dtype sublane packing).
    return 8 * max(1, 4 // int(itemsize))


def _vmem_capacity_bytes():
    # Generation-aware VMEM capacity (64 MiB v7x, 128 MiB v5e/v6e); fall back to
    # the smallest (v7x) if the query is unavailable.
    try:
        cap = getattr(pltpu.get_tpu_info(), "vmem_capacity_bytes", None)
        if cap:
            return int(cap)
    except Exception:
        pass
    return 64 << 20


def _choose_tile_n(n, c, itemsize):
    # Size off the f32 compute working set, not just the input itemsize:
    #   2 double-buffered input tile rows + ~2 live f32 working copies of the
    #   tile inside the kernel + lane-padded (rows, 1) side buffers
    #   (double-buffered int32 targets + f32 intermediates, 512 B/row each).
    per_row = 2 * c * itemsize + 2 * c * 4 + 6 * _LANE_ROW_BYTES
    budget = 14 << 20                      # in-flight bytes; safe in v7x's 32 MiB scoped VMEM
    max_rows = max(1, budget // per_row)
    mult = _sublane_multiple(itemsize)
    if max_rows < mult:
        max_rows = mult
    else:
        max_rows = (max_rows // mult) * mult
    return int(min(16384, max_rows))       # bytes-based target, no small hard cap


def focal_loss(logits, target, gamma=GAMMA, tile_n=None):
    """logits: (N, C) float (f32 or bf16); target: (N,) int class indices. Returns scalar f32."""
    n, c = logits.shape
    itemsize = jnp.dtype(logits.dtype).itemsize
    target2d = target.astype(jnp.int32).reshape(n, 1)

    mult = _sublane_multiple(itemsize)
    if tile_n is None:
        tile_n = _choose_tile_n(n, c, itemsize)
    if tile_n >= n:
        tile_n = n                                  # full dim -> always a legal block shape
    else:
        tile_n = max(mult, (tile_n // mult) * mult) # partial tiles need sublane alignment

    total_tiles = pl.cdiv(n, tile_n)
    n_splits = 2 if total_tiles >= 2 else 1         # leading "parallel" axis (both TCs on v7x)
    tiles_per_split = pl.cdiv(total_tiles, n_splits)
    need_mask = (n_splits * tiles_per_split * tile_n != n)
    last_tile = total_tiles - 1

    def logits_map(s, i):
        return (jnp.minimum(s * tiles_per_split + i, last_tile), 0)

    def target_map(s, i):
        return (jnp.minimum(s * tiles_per_split + i, last_tile), 0)

    def out_map(s, i):
        return (s, 0, 0)

    # VMEM need: double-buffered inputs + in-kernel f32 working copies of the tile
    # + lane-padded (tile_n, 1) buffers (targets x2, f32 intermediates) + slack.
    need = (2 * tile_n * c * itemsize
            + 2 * tile_n * c * 4
            + 2 * tile_n * _LANE_ROW_BYTES
            + 4 * tile_n * _LANE_ROW_BYTES
            + (2 << 20))
    vmem_limit = int(max(8 << 20, min(need, _vmem_capacity_bytes() // 2, 32 << 20)))

    cost = pl.CostEstimate(
        flops=7 * n * c,
        transcendentals=n * c + n,                  # exp over the tile + log per row
        bytes_accessed=n * c * itemsize + n * 4 + n_splits * 8 * 128 * 4,
    )

    kernel = functools.partial(
        _focal_ce_partial_kernel, n_total=n, tile_n=tile_n, need_mask=need_mask)

    partials = pl.pallas_call(
        kernel,
        out_shape=jax.ShapeDtypeStruct((n_splits, 8, 128), jnp.float32),
        grid_spec=pltpu.PrefetchScalarGridSpec(
            num_scalar_prefetch=0,
            grid=(n_splits, tiles_per_split),
            in_specs=[
                pl.BlockSpec((tile_n, c), logits_map),     # logits tile
                pl.BlockSpec((tile_n, 1), target_map),     # target tile
            ],
            out_specs=pl.BlockSpec((1, 8, 128), out_map),  # per-split CE partial sum
        ),
        compiler_params=pltpu.CompilerParams(
            dimension_semantics=("parallel", "arbitrary"),  # split rows / reduce tiles
            vmem_limit_bytes=vmem_limit,
        ),
        cost_estimate=cost,
    )(logits, target2d)

    # Epilogue on scalars (cheap XLA ops): combine per-core partials, mean, focal.
    logp = jnp.sum(partials[:, 0, 0]) / jnp.float32(n)      # scalar mean CE
    p = jnp.exp(-logp)
    gamma = float(gamma)
    if gamma == 1.0:                                        # trace-time simplification
        return (1.0 - p) * logp
    return (1.0 - p) ** gamma * logp


def _reference(logits, target, gamma=GAMMA):
    # pure-JAX reference for verification
    x = logits.astype(jnp.float32)
    lse = jax.scipy.special.logsumexp(x, axis=-1)
    picked = jnp.take_along_axis(x, target[:, None].astype(jnp.int32), axis=-1)[:, 0]
    logp = jnp.mean(lse - picked)
    p = jnp.exp(-logp)
    return (1.0 - p) ** gamma * logp


if __name__ == "__main__":
    key = jax.random.PRNGKey(0)
    k1, k2, k3, k4 = jax.random.split(key, 4)

    # Case 1: N=20, tile_n=8 -> 3 tiles, 2-way split with a clamped duplicate tile
    # and a partial last tile (masking + both-core path exercised).
    N1, C1 = 20, 32
    logits1 = jax.random.normal(k1, (N1, C1), dtype=jnp.float32)
    target1 = jax.random.randint(k2, (N1,), 0, C1, dtype=jnp.int32)
    loss_tiled = focal_loss(logits1, target1, tile_n=8)

    # Case 2: auto tile choice (single full tile, no split, no masking).
    loss_auto = focal_loss(logits1, target1)

    # Case 3: bf16 logits, even split, full tiles (no masking), sublane mult 16.
    N3, C3 = 64, 16
    logits3 = jax.random.normal(k3, (N3, C3), dtype=jnp.float32).astype(jnp.bfloat16)
    target3 = jax.random.randint(k4, (N3,), 0, C3, dtype=jnp.int32)
    loss_bf16 = focal_loss(logits3, target3, tile_n=16)

    jax.block_until_ready((loss_tiled, loss_auto, loss_bf16))

    ref1 = _reference(logits1, target1)
    ref3 = _reference(logits3, target3)
    assert jnp.allclose(loss_tiled, ref1, rtol=1e-5, atol=1e-5), (loss_tiled, ref1)
    assert jnp.allclose(loss_auto, ref1, rtol=1e-5, atol=1e-5), (loss_auto, ref1)
    assert jnp.allclose(loss_bf16, ref3, rtol=1e-4, atol=1e-4), (loss_bf16, ref3)
    print("KERNEL_OK")
</pallas_src>

<mosaic_0001>
module attributes {stable_mosaic.version = 11 : i64} {
  func.func @_focal_ce_partial_kernel(%arg0: i32, %arg1: i32, %arg2: memref<8x32xf32, #tpu.memory_space<vmem>>, %arg3: memref<8x1xi32, #tpu.memory_space<vmem>>, %arg4: memref<1x8x128xf32, #tpu.memory_space<vmem>>) attributes {dimension_semantics = [#tpu.dimension_semantics<parallel>, #tpu.dimension_semantics<arbitrary>], iteration_bounds = array<i64: 2, 2>, scalar_prefetch = 0 : i64, scratch_operands = 0 : i64, tpu.core_type = #tpu.core_type<tc>, window_params = [{transform_indices = @transform_0, window_bounds = array<i64: 8, 32>}, {transform_indices = @transform_1, window_bounds = array<i64: 8, 1>}, {transform_indices = @transform_2, window_bounds = array<i64: 1, 8, 128>}]} {
    %c0_i32 = arith.constant 0 : i32
    %0 = arith.cmpi eq, %arg1, %c0_i32 : i32
    %1 = arith.extui %0 : i1 to i32
    %c0_i32_0 = arith.constant 0 : i32
    %2 = arith.cmpi ne, %1, %c0_i32_0 : i32
    scf.if %2 {
      %cst_15 = arith.constant 0.000000e+00 : f32
      %40 = vector.broadcast %cst_15 : f32 to vector<1x8x128xf32>
      %c0_16 = arith.constant 0 : index
      %c0_17 = arith.constant 0 : index
      %c0_18 = arith.constant 0 : index
      %41 = vector.load %arg4[%c0_16, %c0_17, %c0_18] : memref<1x8x128xf32, #tpu.memory_space<vmem>>, vector<1x8x128xf32>
      tpu.vector_store %arg4[%c0_16, %c0_17, %c0_18], %40 {strides = array<i32>} : memref<1x8x128xf32, #tpu.memory_space<vmem>>, vector<1x8x128xf32>,
    } else {
    }
    %c0 = arith.constant 0 : index
    %c0_1 = arith.constant 0 : index
    %3 = vector.load %arg2[%c0, %c0_1] : memref<8x32xf32, #tpu.memory_space<vmem>>, vector<8x32xf32>
    %c0_2 = arith.constant 0 : index
    %c0_3 = arith.constant 0 : index
    %4 = vector.load %arg3[%c0_2, %c0_3] : memref<8x1xi32, #tpu.memory_space<vmem>>, vector<8x1xi32>
    %cst = arith.constant dense<0xFF800000> : vector<8xf32>
    %5 = vector.multi_reduction <maximumf>, %3, %cst [1] : vector<8x32xf32> to vector<8xf32>
    %6 = vector.shape_cast %5 : vector<8xf32> to vector<8x1xf32>
    %7 = vector.broadcast %6 : vector<8x1xf32> to vector<8x32xf32>
    %8 = arith.subf %3, %7 : vector<8x32xf32>
    %9 = math.exp %8 : vector<8x32xf32>
    %cst_4 = arith.constant dense<0.000000e+00> : vector<8xf32>
    %10 = vector.multi_reduction <add>, %9, %cst_4 [1] : vector<8x32xf32> to vector<8xf32>
    %11 = vector.shape_cast %10 : vector<8xf32> to vector<8x1xf32>
    %12 = math.log %11 : vector<8x1xf32>
    %13 = arith.addf %6, %12 : vector<8x1xf32>
    %14 = tpu.iota {dimensions = array<i32: 1>} : vector<8x32xi32>
    %15 = vector.broadcast %4 : vector<8x1xi32> to vector<8x32xi32>
    %16 = arith.cmpi eq, %14, %15 : vector<8x32xi32>
    %cst_5 = arith.constant 0.000000e+00 : f32
    %17 = vector.broadcast %cst_5 : f32 to vector<8x32xf32>
    %18 = arith.select %16, %3, %17 : vector<8x32xi1>, vector<8x32xf32>
    %cst_6 = arith.constant dense<0.000000e+00> : vector<8xf32>
    %19 = vector.multi_reduction <add>, %18, %cst_6 [1] : vector<8x32xf32> to vector<8xf32>
    %20 = vector.shape_cast %19 : vector<8xf32> to vector<8x1xf32>
    %21 = arith.subf %13, %20 : vector<8x1xf32>
    %22 = tpu.iota {dimensions = array<i32: 0>} : vector<8x1xi32>
    %c2_i32 = arith.constant 2 : i32
    %23 = arith.muli %arg0, %c2_i32 : i32
    %24 = arith.addi %23, %arg1 : i32
    %c8_i32 = arith.constant 8 : i32
    %25 = arith.muli %24, %c8_i32 : i32
    %26 = vector.broadcast %25 : i32 to vector<8x1xi32>
    %27 = arith.addi %26, %22 : vector<8x1xi32>
    %c20_i32 = arith.constant 20 : i32
    %28 = vector.broadcast %c20_i32 : i32 to vector<8x1xi32>
    %29 = arith.cmpi slt, %27, %28 : vector<8x1xi32>
    %cst_7 = arith.constant 0.000000e+00 : f32
    %30 = vector.broadcast %cst_7 : f32 to vector<8x1xf32>
    %31 = arith.select %29, %21, %30 : vector<8x1xi1>, vector<8x1xf32>
    %c0_8 = arith.constant 0 : index
    %c0_9 = arith.constant 0 : index
    %c0_10 = arith.constant 0 : index
    %32 = vector.load %arg4[%c0_8, %c0_9, %c0_10] : memref<1x8x128xf32, #tpu.memory_space<vmem>>, vector<1x8x128xf32>
    %33 = vector.shape_cast %31 : vector<8x1xf32> to vector<1x8x1xf32>
    %cst_11 = arith.constant dense<0.000000e+00> : vector<1xf32>
    %34 = vector.multi_reduction <add>, %33, %cst_11 [1, 2] : vector<1x8x1xf32> to vector<1xf32>
    %35 = vector.shape_cast %34 : vector<1xf32> to vector<1x1x1xf32>
    %36 = vector.extract %35[0, 0, 0] : f32 from vector<1x1x1xf32>
    %37 = vector.broadcast %36 : f32 to vector<1x8x128xf32>
    %38 = arith.addf %32, %37 : vector<1x8x128xf32>
    %c0_12 = arith.constant 0 : index
    %c0_13 = arith.constant 0 : index
    %c0_14 = arith.constant 0 : index
    %39 = vector.load %arg4[%c0_12, %c0_13, %c0_14] : memref<1x8x128xf32, #tpu.memory_space<vmem>>, vector<1x8x128xf32>
    tpu.vector_store %arg4[%c0_12, %c0_13, %c0_14], %38 {strides = array<i32>} : memref<1x8x128xf32, #tpu.memory_space<vmem>>, vector<1x8x128xf32>,
    return
  }
  func.func @transform_0(%arg0: i32, %arg1: i32) -> (i32, i32) {
    %c2_i32 = arith.constant 2 : i32
    %0 = arith.muli %arg0, %c2_i32 : i32
    %1 = arith.addi %0, %arg1 : i32
    %c2_i32_0 = arith.constant 2 : i32
    %2 = arith.minsi %1, %c2_i32_0 : i32
    %c0_i32 = arith.constant 0 : i32
    %c0_i32_1 = arith.constant 0 : i32
    return %2, %c0_i32 : i32, i32
  }
  func.func @transform_1(%arg0: i32, %arg1: i32) -> (i32, i32) {
    %c2_i32 = arith.constant 2 : i32
    %0 = arith.muli %arg0, %c2_i32 : i32
    %1 = arith.addi %0, %arg1 : i32
    %c2_i32_0 = arith.constant 2 : i32
    %2 = arith.minsi %1, %c2_i32_0 : i32
    %c0_i32 = arith.constant 0 : i32
    %c0_i32_1 = arith.constant 0 : i32
    return %2, %c0_i32 : i32, i32
  }
  func.func @transform_2(%arg0: i32, %arg1: i32) -> (i32, i32, i32) {
    %c0_i32 = arith.constant 0 : i32
    %c0_i32_0 = arith.constant 0 : i32
    %c0_i32_1 = arith.constant 0 : i32
    return %arg0, %c0_i32, %c0_i32_0 : i32, i32, i32
  }
}

</mosaic_0001>

<bundles_post_ra>
// kernel: tpu_custom_call.1
= control target key start
LH: loop header
LB: loop body
LE: loop exit
PB: predicated region body
PF: predicated region fallthrough
CT: control target
= control target key end

     0   :  { %7 = vsyncpa [#allocation3], 0  ;;  %s735_s0 = inlined_call_operand.vmem [shape: f32[20,32], index: 0, kind: input, shape index: {}]   ;;  %s736_s1 = inlined_call_operand.vmem [shape: s32[20,1], index: 1, kind: input, shape index: {}]   ;;  %s737_s2 = inlined_call_operand.hbm [shape: f32[2,8,128], index: 2, kind: output, shape index: {}]  }
   0x1   :  { %9 = vsyncpa [#allocation3 + $0x1], 0  ;;  %s594_s9 = smov 0   ;;  %s596_s10 = smov 0  }
   0x2   :  { %s598_s11 = smov 0   ;;  %s600_s12 = smov 0  }
   0x3   :  { %s602_s13 = smov 0   ;;  %s604_s14 = smov 0  }
   0x4   :  { %s606_s15 = smov 0   ;;  %s608_s16 = smov 0  }
   0x5 LB: > { %s375_s17 = sadd.s32 4294967295, %s574_s16   ;;  %s376_s18 = sadd.s32 4294967294, %s574_s16   ;;  %s574_s16 = sphi %s608_s16, %s15_s16   ;;  %s570_s15 = sphi %s606_s15, %s746_s15   ;;  %s566_s14 = sphi %s604_s14, %s745_s14   ;;  %s562_s13 = sphi %s602_s13, %s744_s13   ;;  %s558_s12 = sphi %s600_s12, %s743_s12   ;;  %s554_s11 = sphi %s598_s11, %s742_s11   ;;  %s550_s10 = sphi %s596_s10, %s741_s10   ;;  %s546_s9 = sphi %s594_s9, %s740_s9  }
   0x6   : > { %s24_s19 = sadd.s32 1, %s566_s14  ;;  %s27_s20 = sadd.s32 1, %s570_s15 }
   0x7   : > { %p25_p0 = scmp.ge.s32.totalorder %s24_s19, 2  ;;  %p112_p1 = scmp.ne.s32.totalorder %s554_s11, %s550_s10 }
   0x8   : > { %p113_p2 = scmp.eq.s32.totalorder %s375_s17, 3  ;;  %p118_p4 = scmp.ne.s32.totalorder %s550_s10, %s546_s9 }
   0x9   : > { %s748_s19 = smov (%p25_p0, %s24_s19), 0  ;;  %s750_s20 = smov (!%p25_p0, %s27_s20), %s570_s15 }
   0xa   : > { %p643_p3 = por %p113_p2, %p112_p1  ;;  %p29_p5 = scmp.ge.s32.totalorder %s750_s20, 2 }
   0xb   : > { %p119_p6 = scmp.eq.s32.totalorder %s376_s18, 3  ;;  %p383_p7 = scmp.ge.s32.totalorder %s574_s16, 1 }
   0xc   : > { %p167_p8 = scmp.lt.s32.totalorder %s574_s16, 5  ;;  %s752_s20 = smov (%p29_p5, %s750_s20), 0 }
   0xd   : > { %p653_p9 = por %p119_p6, %p118_p4  ;;  %s99_s23 = ssub.s32 %s570_s15, %s752_s20 }
   0xe   : > { %p168_p10 = pnand %p383_p7, %p167_p8  ;;  %s102_s24 = sadd.s32 1, %s554_s11 }
   0xf   : > { %p100_p11 = scmp.eq.s32.totalorder %s99_s23, 0  ;;  %s197_s26 = sand.u32 (!%p168_p10), 1, %s550_s10  }
  0x10   : > { %171 = sbr.rel (%p168_p10) target bundleno = 564 (0x234), region = 28  ;;  %s385_s27 = sshll.u32 (!%p168_p10), %s562_s13, 1 }
  0x11   : > { %s661_s25 = scalar_select %p100_p11, %s554_s11, %s102_s24  }
  0x12   : > { %s384_s28 = sshll.u32 (!%p168_p10), %s197_s26, 3  ;;  %s668_s29 = sadd.s32 (!%p168_p10), %s558_s12, %s385_s27 }
  0x13   : > { %p202_p12 = scmp.lt.s32.totalorder (!%p168_p10), %s668_s29, 2  ;;  %s678_s18 = scalar_lea.vmem (!%p168_p10), [#allocation2], %s384_s28 }
  0x14   : > { %p395_p13 = scmp.ne.s32.totalorder (!%p168_p10), %s558_s12, 0 }
  0x15   : > { %s203_s30 = scalar_select %p202_p12, %s668_s29, 2 }
  0x16   : > { %227 = sbr.rel (%p395_p13) target bundleno = 29 (0x1d), region = 32 }
  0x17   : > { %s754_s30 = smov (!%p202_p12, %s203_s30), 2 }
  0x18   : > { %s389_s3 = sshll.u32 %s754_s30, 3 }
  0x19   : > { %s207_s6 = scalar_lea.vmem %s735_s0, %s389_s3  ;;  %s219_s17 = scalar_lea.vmem %s736_s1, %s389_s3 }
  0x1b   : > { %v576_v0 = vmov 0.0  }
  0x1c   : > { %228 = vst [vmem:[%s678_s18] sm:$0xff] %v576_v0 }
  0x1d PF: > { %v229_v1 = vld [vmem:[%s207_s6] sm:$0xff]  ;;  %vm231_vm0 = vcmask 261120   ;;  %v577_v3 = vmov 0   ;;  %v244_v8 = vlaneseq  ;;  %s397_s12 = sshll.u32 %s668_s29, 3  ;;  %vm265_vm3 = vcmask 7168   ;;  %s399_s23 = sshll.u32 %s562_s13, 7 }
  0x1e   : > { %v232_v2 = vsel %vm231_vm0, %v229_v1, -inf  ;;  %477 = vset.pattern.permute.xlu0 %v577_v3  ;;  %v230_v4 = vld [vmem:[%s219_s17] sm:$0xff]  ;;  %v260_v17 = vstv %s397_s12  ;;  %s293_s24 = sshll.u32 %s678_s18, 4  ;;  %s291_s30 = scalar_lea.hbm %s737_s2, %s399_s23  ;;  %s294_s24 = int_to_ptr.vmem [resolvable:$true] %s293_s24 }
  0x1f   : > { %233 = vmax.xlane.f32.xlu0 %v232_v2  ;;  %v245_v9 = vand.u32 127, %v244_v8  ;;  %v256_v16 = vshrl.u32 %v244_v8, 7  ;;  %s280_s3 = scalar_lea.sflag [#allocation3], %s197_s26  ;;  %s482_s4 = scalar_lea.vmem %s294_s24, 128 }
  0x20   : > { %p483_p0 = scmp.ne.s32.totalorder %s294_s24, %s482_s4  ;;  %s578_s5 = smov [#allocation2]  }
  0x21   : > { %v261_v19 = vadd.s32 %v260_v17, %v256_v16  ;;  %s486_s6 = sshll.u32 %s578_s5, 4  ;;  %s487_s6 = int_to_ptr.vmem [resolvable:$false] %s486_s6 }
  0x22   : > { %p484_p1 = pnand %p483_p0, %p643_p3  ;;  %s488_s13 = scalar_lea.vmem %s487_s6, 256 }
  0x23   : > { %vm262_vm2 = vcmp.lt.s32.totalorder %v261_v19, 20  ;;  %v264_v33 = vld [vmem:[%s678_s18] sm:$0xff]  ;;  %p489_p4 = scmp.lt.s32.totalorder %s294_s24, %s487_s6  ;;  %p490_p5 = scmp.lt.s32.totalorder %s488_s13, %s482_s4 }
  0x24   : > { %p485_p2 = pneg %p484_p1 }
  0x25   : > { %p491_p6 = por %p490_p5, %p489_p4 }
  0x27   : > { %p492_p7 = pnand %p491_p6, %p485_p2 }
  0x35   : > { %247 = vperm.xlu0 %477, %v230_v4  }
  0xa8   : > { %v234_v5 = vpop.xlane.xlu0 %233 }
  0xa9   : > { %v235_v6 = vsub.f32 %v229_v1, %v234_v5 }
  0xab   : > { %v236_v7 = vmul.f32 1.442695, %v235_v6 }
  0xad   : > { %478 = vpow2.f32 %v236_v7 }
  0xb0   : > { %v248_v10 = vpop.permute.xlu0 %247 }
  0xb1   : > { %vm249_vm1 = vcmp.eq.s32.totalorder %v245_v9, %v248_v10 }
  0xb2   : > { %v250_v12 = vsel %vm249_vm1, %v229_v1, 0.0 }
  0xb3   : > { %v251_v14 = vsel %vm231_vm0, %v250_v12, 0.0 }
  0xba   : > { %v479_v11 = vpop.eup %478 }
  0xbb   : > { %v238_v13 = vsel %vm231_vm0, %v479_v11, 0.0 }
  0xbc   : > { %239 = vadd.xlane.f32.xlu1 %v238_v13 }
  0xc0   : > { %252 = vadd.xlane.f32.xlu1 %v251_v14 }
 0x145   : > { %v240_v15 = vpop.xlane.xlu1 %239 }
 0x146   : > { %480 = vlog2.f32 %v240_v15 }
 0x149   : > { %v253_v21 = vpop.xlane.xlu1 %252 }
 0x153   : > { %v481_v18 = vpop.eup %480 }
 0x154   : > { %v242_v20 = vmul.f32 0.6931472, %v481_v18 }
 0x156   : > { %v243_v22 = vadd.f32 %v242_v20, %v234_v5 }
 0x158   : > { %v254_v23 = vsub.f32 %v243_v22, %v253_v21 }
 0x15a   : > { %v263_v24 = vsel %vm262_vm2, %v254_v23, 0.0 }
 0x15b   : > { %v266_v25 = vsel %vm265_vm3, %v263_v24, 0.0 }
 0x15c   : > { %267 = vadd.xlane.f32.xlu1 %v266_v25 }
 0x1e5   : > { %v268_v26 = vpop.xlane.xlu1 %267 }
 0x1e6   : > { %v269_v27 = vrot.slane %v268_v26, 4 }
 0x1e8   : > { %v270_v28 = vadd.f32 %v269_v27, %v268_v26 }
 0x1ea   : > { %v271_v29 = vrot.slane %v270_v28, 2 }
 0x1ec   : > { %v272_v30 = vadd.f32 %v271_v29, %v270_v28 }
 0x1ee   : > { %v273_v31 = vrot.slane %v272_v30, 1 }
 0x1f0   : > { %v274_v32 = vadd.f32 %v273_v31, %v272_v30 }
 0x1f2   : > { %402 = vpush %v274_v32 }
 0x223   : > { %s403_s27 = spop %402 }
 0x224   : > { %v276_v34 = vstv %s403_s27 }
 0x225   : > { %v277_v35 = vadd.f32 %v276_v34, %v264_v33 }
 0x227   : > { %278 = vst [vmem:[%s678_s18] sm:$0xff] %v277_v35 }
 0x228   : > { %495 = shalt.err (!%p492_p7)
}
 0x229   : > { %s496_s7 = scalar_lea.hbm %s291_s30, 128  ;;  %s500_s17 = scalar_lea.hbm %s737_s2, 256 }
 0x22a   : > { %p497_p8 = scmp.ne.s32.totalorder %s291_s30, %s496_s7  ;;  %p501_p12 = scmp.lt.s32.totalorder %s291_s30, %s737_s2 }
 0x22b   : > { %p502_p13 = scmp.lt.s32.totalorder %s500_s17, %s496_s7 }
 0x22c   : > { %p498_p10 = pnand %p497_p8, %p643_p3 }
 0x22d   : > { %p503_p0 = por %p502_p13, %p501_p12 }
 0x22e   : > { %p499_p11 = pneg %p498_p10 }
 0x230   : > { %p504_p1 = pnand %p503_p0, %p499_p11 }
 0x232   : > { %507 = shalt.err (!%p504_p1)
}
 0x233   : > { %404 = dma.vmem_to_hbm [thread:$0]  (%p643_p3), %s294_s24, 128, %s291_s30, %s280_s3  }
 0x234 PF: > { %p410_p2 = scmp.ge.s32.totalorder %s574_s16, 2  ;;  %s305_s23 = sand.u32 1, %s546_s9  }
 0x235   : > { %s306_s27 = scalar_lea.sflag [#allocation3], %s305_s23 }
 0x236   : > { %p407_p4 = pnand %p410_p2, %p653_p9 }
 0x238   : > { %p408_p5 = pneg %p407_p4 }
 0x23a   : > { %541 = dma.done.wait (%p408_p5), %s306_s27, 128  }
 0x23b   : > { %543 = vsyncadd (%p408_p5), %s306_s27, 4294967168  ;;  %s15_s16 = sadd.s32 1, %s574_s16   ;;  %s740_s9 = smov %s550_s10 }
 0x23c   : > { %p12_p6 = scmp.ge.s32.totalorder %s15_s16, 6   ;;  %s741_s10 = smov %s554_s11 }
 0x23d   : > { %s742_s11 = smov %s661_s25  ;;  %s743_s12 = smov %s566_s14 }
 0x23e   : > { %s744_s13 = smov %s570_s15  ;;  %s745_s14 = smov %s748_s19 }
 0x23f   : > { %s746_s15 = smov %s752_s20  ;;  %14 = sbr.rel (!%p12_p6) target bundleno = 5 (0x5), region = 70 }
 0x244   :  { %311 = vsyncpa [#allocation3], 1 }
 0x245   :  { %313 = vsyncpa [#allocation3 + $0x1], 1 }

</bundles_post_ra>
